<compile_context>
chip_gen: v5e
topology: v5e:2x2
jax: 0.10.0
libtpu: 0.0.40
codegen_flags: <defaults>
</compile_context>

<pallas_src>
import functools

import jax
import jax.numpy as jnp
from jax import lax
from jax.experimental import pallas as pl
from jax.experimental.pallas import tpu as pltpu


def _block_mask_from_noise(noise, valid, *, gamma, pad, img_w):
    """0/1 keep-mask: 1 iff no dropped seed lies in the clipped cbs x cbs window.

    noise: (tile_nc, H*W) f32, valid: (1, H*W) f32 -- images flattened on lanes.
    """
    keep_seed = ((2.0 - gamma) - valid + noise >= 1.0).astype(jnp.float32)
    if pad == 0:
        return keep_seed
    cnt = 1.0 - keep_seed                    # 1 where a block seed was sampled
    n = cnt.shape[-1]
    # Separable dilation of the seed map by [-pad, +pad] in W then in H, done
    # on the flattened lane axis with log-doubling shifts (only cnt>0 matters,
    # so overlap/double-counting during doubling is harmless).  Seeds live
    # >= pad rows and >= pad cols away from every image border, so no shift
    # ever moves a nonzero value across an image/row boundary (wrap-free).
    for step in (1, img_w):                  # W pass (cols), then H pass (rows)
        covered = 1                          # cnt currently covers offsets [0, covered)
        while covered <= pad:
            d = min(covered, pad + 1 - covered)
            cnt = cnt + pltpu.roll(cnt, shift=d * step, axis=1)
            covered += d
        # Mirror: union with the copy shifted by -pad (as a positive circular shift).
        cnt = cnt + pltpu.roll(cnt, shift=(n - pad * step) % n, axis=1)
    return (cnt < 0.5).astype(jnp.float32)


def _mask_sum_kernel(noise_ref, valid_ref, psum_ref, *, gamma, pad, img_w,
                     tile_nc, rows_last):
    """Phase 1: per-tile partial sum of the block (keep) mask."""
    mask = _block_mask_from_noise(noise_ref[...], valid_ref[...],
                                  gamma=gamma, pad=pad, img_w=img_w)
    if rows_last == tile_nc:
        # Tiles divide N*C exactly: plain sum on every tile (no iota/where work).
        psum_ref[...] = jnp.full((1, 1, 128), jnp.sum(mask), jnp.float32)
    else:
        is_last = pl.program_id(0) == pl.num_programs(0) - 1

        @pl.when(jnp.logical_not(is_last))
        def _():
            psum_ref[...] = jnp.full((1, 1, 128), jnp.sum(mask), jnp.float32)

        @pl.when(is_last)                    # exclude garbage rows of ragged tile
        def _():
            row = lax.broadcasted_iota(jnp.int32, mask.shape, 0)
            s = jnp.sum(jnp.where(row < rows_last, mask, 0.0))
            psum_ref[...] = jnp.full((1, 1, 128), s, jnp.float32)


def _apply_kernel(scale_ref, x_ref, noise_ref, valid_ref, out_ref, *,
                  gamma, pad, img_w):
    """Phase 2: recompute the mask from the same noise and apply x*mask*scale."""
    mask = _block_mask_from_noise(noise_ref[...], valid_ref[...],
                                  gamma=gamma, pad=pad, img_w=img_w)
    # TODO(synk): on v6e/v7x a bf16 x could be multiplied in bf16 (mask*scale
    # pre-cast) to halve VPU work; kept in f32 here so v5e never regresses.
    out_ref[...] = (x_ref[...].astype(jnp.float32) * mask
                    * scale_ref[0]).astype(out_ref.dtype)


def drop_block_2d_pallas(x, drop_prob=0.1, training=True, block_size=7,
                         gamma_scale=1.0, with_noise=False, *, seed=0,
                         noise=None, tile_elems=512 * 1024):
    """Pallas TPU implementation of timm drop_block_2d (with_noise=False path).

    noise: optional uniform-[0,1) f32 tensor of x.shape standing in for
           torch.rand_like(x) (deterministic testing path).  If None, noise is
           generated with jax.random.uniform(PRNGKey(seed), ...).
    tile_elems: target elements of x per grid tile (~2 MiB f32 per buffer).
    """
    if drop_prob == 0.0 or not training:
        return x
    if with_noise:
        # TODO(synk): gaussian-noise variant (x*mask + randn*(1-mask)) not wired up.
        raise NotImplementedError("with_noise=True path not implemented")

    N, C, H, W = x.shape
    total_size = W * H
    cbs = min(block_size, min(W, H))
    assert cbs % 2 == 1, "kernel assumes an odd clipped block size (as in timm usage)"
    pad = cbs // 2
    gamma = float(gamma_scale * drop_prob * total_size / cbs ** 2 /
                  ((W - block_size + 1) * (H - block_size + 1)))
    # Seeds must be confined to the valid interior region (wrap-free rolls).
    assert 0.0 < gamma < 1.0

    # Valid-seed region, reproducing the torch meshgrid('ij') + reshape quirk.
    w_i, h_i = jnp.meshgrid(jnp.arange(W), jnp.arange(H), indexing='ij')   # (W, H)
    valid = ((w_i >= cbs // 2) & (w_i < W - (cbs - 1) // 2) &
             (h_i >= cbs // 2) & (h_i < H - (cbs - 1) // 2))
    valid = valid.reshape(1, H * W).astype(jnp.float32)

    NC, HW = N * C, H * W
    numel = NC * HW
    x2 = x.reshape(NC, HW)                              # free (bitcast) reshape
    if noise is None:
        noise2 = jax.random.uniform(jax.random.PRNGKey(seed), (NC, HW), jnp.float32)
    else:
        noise2 = noise.astype(jnp.float32).reshape(NC, HW)

    # NC tiling: ~tile_elems elements per tile, multiple of 8 sublanes.  No NC
    # padding: the ragged last tile is handled by Pallas (OOB writes dropped,
    # phase 1 masks OOB rows out of the global sum).
    target = max(1, tile_elems // HW)
    tile_nc = NC if target >= NC else min(NC, max(8, (target // 8) * 8))
    num_tiles = pl.cdiv(NC, tile_nc)
    rows_last = NC - (num_tiles - 1) * tile_nc

    tile_spec = pl.BlockSpec((tile_nc, HW), lambda i: (i, 0))
    valid_spec = pl.BlockSpec((1, HW), lambda i: (0, 0))
    smem_spec = pl.BlockSpec(memory_space=pltpu.MemorySpace.SMEM)
    psum_spec = pl.BlockSpec((1, 1, 128), lambda i: (i, 0, 0))
    cparams = pltpu.CompilerParams(
        dimension_semantics=("parallel",),              # megacore tile split
        vmem_limit_bytes=48 * 1024 * 1024)              # < 64 MiB/TC on v7x

    common = dict(gamma=gamma, pad=pad, img_w=W)

    # ---- phase 1: per-tile partial sums of the block mask -------------------
    psums = pl.pallas_call(
        functools.partial(_mask_sum_kernel, tile_nc=tile_nc,
                          rows_last=rows_last, **common),
        grid=(num_tiles,),
        in_specs=[tile_spec, valid_spec],
        out_specs=psum_spec,
        out_shape=jax.ShapeDtypeStruct((num_tiles, 1, 128), jnp.float32),
        compiler_params=cparams,
    )(noise2, valid)

    total = jnp.sum(psums[:, 0, 0])
    scale = (jnp.float32(numel) / (total + 1e-7)).reshape(1)

    # ---- phase 2: recompute the mask and apply x * mask * scale -------------
    out = pl.pallas_call(
        functools.partial(_apply_kernel, **common),
        grid=(num_tiles,),
        in_specs=[smem_spec, tile_spec, tile_spec, valid_spec],
        out_specs=tile_spec,
        out_shape=jax.ShapeDtypeStruct((NC, HW), x.dtype),
        compiler_params=cparams,
    )(scale, x2, noise2, valid)

    return out.reshape(N, C, H, W)


def _drop_block_2d_ref(x, noise, drop_prob=0.1, block_size=7, gamma_scale=1.0):
    """Pure-JAX port of the PyTorch reference (same uniform noise)."""
    N, C, H, W = x.shape
    total_size = W * H
    cbs = min(block_size, min(W, H))
    gamma = (gamma_scale * drop_prob * total_size / cbs ** 2 /
             ((W - block_size + 1) * (H - block_size + 1)))
    w_i, h_i = jnp.meshgrid(jnp.arange(W), jnp.arange(H), indexing='ij')
    valid = ((w_i >= cbs // 2) & (w_i < W - (cbs - 1) // 2) &
             (h_i >= cbs // 2) & (h_i < H - (cbs - 1) // 2))
    valid = valid.reshape(1, 1, H, W).astype(jnp.float32)
    bm = (2.0 - gamma - valid + noise.astype(jnp.float32) >= 1.0).astype(jnp.float32)
    pad = cbs // 2
    bm = -lax.reduce_window(-bm, -jnp.inf, lax.max, (1, 1, cbs, cbs),
                            (1, 1, 1, 1),
                            ((0, 0), (0, 0), (pad, pad), (pad, pad)))
    scale = bm.size / (jnp.sum(bm) + 1e-07)
    return x * bm * scale


if __name__ == "__main__":
    key = jax.random.PRNGKey(0)
    kx, kn, kx2, kn2 = jax.random.split(key, 4)
    x = jax.random.normal(kx, (2, 4, 16, 16), dtype=jnp.float32)
    noise = jax.random.uniform(kn, x.shape, dtype=jnp.float32)

    # 1) external-noise test path vs pure-JAX reference
    out = drop_block_2d_pallas(x, drop_prob=0.1, training=True, block_size=7,
                               gamma_scale=1.0, noise=noise)
    out = jax.block_until_ready(out)
    ref = _drop_block_2d_ref(x, noise, drop_prob=0.1, block_size=7)
    assert out.shape == x.shape and out.dtype == x.dtype
    assert jnp.allclose(out, ref, rtol=1e-5, atol=1e-5), "mismatch vs reference (1)"

    # 2) ragged N*C (not a multiple of the tile) + multi-tile grid, higher rate
    xr = jax.random.normal(kx2, (2, 5, 16, 16), dtype=jnp.float32)
    nr = jax.random.uniform(kn2, xr.shape, dtype=jnp.float32)
    out2 = drop_block_2d_pallas(xr, drop_prob=0.4, training=True, block_size=7,
                                noise=nr, tile_elems=8 * 16 * 16)
    ref2 = _drop_block_2d_ref(xr, nr, drop_prob=0.4, block_size=7)
    assert jnp.allclose(jax.block_until_ready(out2), ref2, rtol=1e-5, atol=1e-5), \
        "mismatch vs reference (2, ragged multi-tile)"

    # 3) deterministic single seed at the corner of the valid region
    #    (exercises the zero-padded window edges exactly)
    pad = 7 // 2
    noise3 = jnp.full(x.shape, 0.9, jnp.float32).at[0, 0, pad, pad].set(0.0)
    out3 = drop_block_2d_pallas(x, drop_prob=0.1, training=True, block_size=7,
                                noise=noise3)
    ref3 = _drop_block_2d_ref(x, noise3, drop_prob=0.1, block_size=7)
    assert jnp.allclose(jax.block_until_ready(out3), ref3, rtol=1e-5, atol=1e-5), \
        "mismatch vs reference (3, corner seed)"

    # 4) production path: wrapper-generated noise (sanity + determinism checks)
    out4 = drop_block_2d_pallas(x, drop_prob=0.1, training=True, block_size=7, seed=123)
    out4b = drop_block_2d_pallas(x, drop_prob=0.1, training=True, block_size=7, seed=123)
    out4 = jax.block_until_ready(out4)
    out4b = jax.block_until_ready(out4b)
    assert out4.shape == x.shape and out4.dtype == x.dtype
    assert bool(jnp.all(jnp.isfinite(out4)))
    assert jnp.array_equal(out4, out4b), "same seed must give identical output"
    # every surviving element equals x * s for one global scale s (mask in {0,1})
    nz = jnp.abs(out4) > 0
    ratios = jnp.where(nz, out4 / jnp.where(nz, x, 1.0), jnp.nan)
    s = jnp.nanmax(ratios)
    assert bool(jnp.all(jnp.where(nz, jnp.abs(ratios - s) < 1e-4 * s, True)))

    # 5) eval-mode / drop_prob==0 early-return path
    out_eval = drop_block_2d_pallas(x, drop_prob=0.1, training=False)
    assert jnp.array_equal(out_eval, x)

    print("KERNEL_OK")
</pallas_src>

<mosaic_0001>
module attributes {stable_mosaic.version = 11 : i64} {
  func.func @_mask_sum_kernel(%arg0: i32, %arg1: memref<8x256xf32, #tpu.memory_space<vmem>>, %arg2: memref<1x256xf32, #tpu.memory_space<vmem>>, %arg3: memref<1x1x128xf32, #tpu.memory_space<vmem>>) attributes {dimension_semantics = [#tpu.dimension_semantics<parallel>], iteration_bounds = array<i64: 1>, scalar_prefetch = 0 : i64, scratch_operands = 0 : i64, tpu.core_type = #tpu.core_type<tc>, window_params = [{transform_indices = @transform_0, window_bounds = array<i64: 8, 256>}, {pipeline_mode = #tpu.pipeline_mode<synchronous>, transform_indices = @transform_1, window_bounds = array<i64: 1, 256>}, {transform_indices = @transform_2, window_bounds = array<i64: 1, 1, 128>}]} {
    %c0 = arith.constant 0 : index
    %c0_0 = arith.constant 0 : index
    %0 = vector.load %arg1[%c0, %c0_0] : memref<8x256xf32, #tpu.memory_space<vmem>>, vector<8x256xf32>
    %c0_1 = arith.constant 0 : index
    %c0_2 = arith.constant 0 : index
    %1 = vector.load %arg2[%c0_1, %c0_2] : memref<1x256xf32, #tpu.memory_space<vmem>>, vector<1x256xf32>
    %cst = arith.constant 1.99477553 : f32
    %2 = vector.broadcast %cst : f32 to vector<1x256xf32>
    %3 = arith.subf %2, %1 : vector<1x256xf32>
    %4 = vector.broadcast %3 : vector<1x256xf32> to vector<8x256xf32>
    %5 = arith.addf %4, %0 : vector<8x256xf32>
    %cst_3 = arith.constant 1.000000e+00 : f32
    %6 = vector.broadcast %cst_3 : f32 to vector<8x256xf32>
    %7 = arith.cmpf oge, %5, %6 : vector<8x256xf32>
    %8 = arith.extui %7 : vector<8x256xi1> to vector<8x256xi32>
    %9 = arith.sitofp %8 : vector<8x256xi32> to vector<8x256xf32>
    %cst_4 = arith.constant 1.000000e+00 : f32
    %10 = vector.broadcast %cst_4 : f32 to vector<8x256xf32>
    %11 = arith.subf %10, %9 : vector<8x256xf32>
    %c1_i32 = arith.constant 1 : i32
    %12 = tpu.dynamic_rotate %11 by %c1_i32 dim 1 : vector<8x256xf32>, i32 -> vector<8x256xf32>
    %13 = arith.addf %11, %12 : vector<8x256xf32>
    %c2_i32 = arith.constant 2 : i32
    %14 = tpu.dynamic_rotate %13 by %c2_i32 dim 1 : vector<8x256xf32>, i32 -> vector<8x256xf32>
    %15 = arith.addf %13, %14 : vector<8x256xf32>
    %c253_i32 = arith.constant 253 : i32
    %16 = tpu.dynamic_rotate %15 by %c253_i32 dim 1 : vector<8x256xf32>, i32 -> vector<8x256xf32>
    %17 = arith.addf %15, %16 : vector<8x256xf32>
    %c16_i32 = arith.constant 16 : i32
    %18 = tpu.dynamic_rotate %17 by %c16_i32 dim 1 : vector<8x256xf32>, i32 -> vector<8x256xf32>
    %19 = arith.addf %17, %18 : vector<8x256xf32>
    %c32_i32 = arith.constant 32 : i32
    %20 = tpu.dynamic_rotate %19 by %c32_i32 dim 1 : vector<8x256xf32>, i32 -> vector<8x256xf32>
    %21 = arith.addf %19, %20 : vector<8x256xf32>
    %c208_i32 = arith.constant 208 : i32
    %22 = tpu.dynamic_rotate %21 by %c208_i32 dim 1 : vector<8x256xf32>, i32 -> vector<8x256xf32>
    %23 = arith.addf %21, %22 : vector<8x256xf32>
    %cst_5 = arith.constant 5.000000e-01 : f32
    %24 = vector.broadcast %cst_5 : f32 to vector<8x256xf32>
    %25 = arith.cmpf olt, %23, %24 : vector<8x256xf32>
    %26 = arith.extui %25 : vector<8x256xi1> to vector<8x256xi32>
    %27 = arith.sitofp %26 : vector<8x256xi32> to vector<8x256xf32>
    %28 = vector.shape_cast %27 : vector<8x256xf32> to vector<1x8x256xf32>
    %cst_6 = arith.constant dense<0.000000e+00> : vector<1xf32>
    %29 = vector.multi_reduction <add>, %28, %cst_6 [1, 2] : vector<1x8x256xf32> to vector<1xf32>
    %30 = vector.shape_cast %29 : vector<1xf32> to vector<1x1x1xf32>
    %31 = vector.extract %30[0, 0, 0] : f32 from vector<1x1x1xf32>
    %32 = vector.broadcast %31 : f32 to vector<1x1x128xf32>
    %c0_7 = arith.constant 0 : index
    %c0_8 = arith.constant 0 : index
    %c0_9 = arith.constant 0 : index
    %33 = vector.load %arg3[%c0_7, %c0_8, %c0_9] : memref<1x1x128xf32, #tpu.memory_space<vmem>>, vector<1x1x128xf32>
    tpu.vector_store %arg3[%c0_7, %c0_8, %c0_9], %32 {strides = array<i32>} : memref<1x1x128xf32, #tpu.memory_space<vmem>>, vector<1x1x128xf32>,
    return
  }
  func.func @transform_0(%arg0: i32) -> (i32, i32) {
    %c0_i32 = arith.constant 0 : i32
    %c0_i32_0 = arith.constant 0 : i32
    return %arg0, %c0_i32 : i32, i32
  }
  func.func @transform_1(%arg0: i32) -> (i32, i32) {
    %c0_i32 = arith.constant 0 : i32
    %c0_i32_0 = arith.constant 0 : i32
    %c0_i32_1 = arith.constant 0 : i32
    return %c0_i32, %c0_i32_0 : i32, i32
  }
  func.func @transform_2(%arg0: i32) -> (i32, i32, i32) {
    %c0_i32 = arith.constant 0 : i32
    %c0_i32_0 = arith.constant 0 : i32
    %c0_i32_1 = arith.constant 0 : i32
    return %arg0, %c0_i32, %c0_i32_0 : i32, i32, i32
  }
}

</mosaic_0001>

<bundles_post_ra>
// kernel: tpu_custom_call.1
= control target key start
LH: loop header
LB: loop body
LE: loop exit
PB: predicated region body
PF: predicated region fallthrough
CT: control target
= control target key end

     0   :  { %7 = vsyncpa [#allocation3], 0  ;;  %s283_s0 = inlined_call_operand.hbm [shape: f32[8,256], index: 0, kind: input, shape index: {}]   ;;  %s284_s1 = inlined_call_operand.hbm [shape: f32[1,256], index: 1, kind: input, shape index: {}]   ;;  %s285_s2 = inlined_call_operand.hbm [shape: f32[1,1,128], index: 2, kind: output, shape index: {}]  }
   0x1   :  { %8 = vsyncpa [#allocation6], 0 }
   0x2   :  { %9 = vsyncpa [#allocation4], 0  ;;  %s15_s11 = sshll.u32 %s283_s0, 4  ;;  %s245_s12 = smov [#allocation2]   ;;  %s16_s11 = int_to_ptr.hbm [resolvable:$true] %s15_s11 }
   0x3   :  { %s17_s13 = sshll.u32 %s245_s12, 4  ;;  %s26_s16 = sshll.u32 %s284_s1, 4  ;;  %s18_s13 = int_to_ptr.vmem [resolvable:$true] %s17_s13  ;;  %s27_s16 = int_to_ptr.hbm [resolvable:$true] %s26_s16 }
   0x4   :  { %20 = dma.hbm_to_vmem [thread:$0]  %s16_s11, 256, %s18_s13, [#allocation3]  }
   0x5   :  { %s246_s17 = smov [#allocation5]  }
   0x6   :  { %s28_s18 = sshll.u32 %s246_s17, 4  ;;  %s29_s18 = int_to_ptr.vmem [resolvable:$true] %s28_s18 }
   0x7   :  { %31 = dma.hbm_to_vmem [thread:$0]  %s27_s16, 32, %s29_s18, [#allocation6]  }
   0x8   :  { %239 = dma.done.wait [#allocation3], 256  }
   0x9   :  { %240 = vsyncadd [#allocation3], 4294967040 }
   0xa   :  { %241 = dma.done.wait [#allocation6], 32  }
   0xb   :  { %242 = vsyncadd [#allocation6], 4294967264  ;;  %v42_v0 = vld [vmem:[#allocation5] sm:$0x3]  ;;  %v40_v2 = vld [vmem:[#allocation2] sm:$0xff]  ;;  %v247_v8 = vmov 0.0   ;;  %v63_v13 = vlaneseq }
   0xc   :  { %v43_v1 = vsub.f32 1.9947755, %v42_v0  ;;  %v41_v3 = vld [vmem:[#allocation2 + $0x8] sm:$0xff]  ;;  %s248_s0 = smov 1   ;;  %s249_s1 = smov 2  }
   0xd   :  { %v64_v15 = vand.u32 127, %v63_v13  ;;  %s250_s19 = smov 125   ;;  %s251_s20 = smov 16  }
   0xe   :  { %v45_v4 = vperm.slane %v43_v1, 0  ;;  %v46_v5 = vperm.slane %v43_v1, 1  ;;  %s252_s21 = smov 32   ;;  %s253_s22 = smov 80  }
   0xf   :  { %vm65_vm2 = vcmp.lt.s32.totalorder %v64_v15, 1  ;;  %vm74_vm3 = vcmp.lt.s32.totalorder %v64_v15, 2  ;;  %vm83_vm4 = vcmp.lt.s32.totalorder %v64_v15, 125  ;;  %vm92_vm5 = vcmp.lt.s32.totalorder %v64_v15, 16  ;;  %s254_s23 = smov [#allocation7]   ;;  %s140_s27 = sshll.u32 %s285_s2, 4  ;;  %s141_s27 = int_to_ptr.hbm [resolvable:$true] %s140_s27 }
  0x10   :  { %v49_v6 = vadd.f32 %v45_v4, %v40_v2  ;;  %v50_v7 = vadd.f32 %v46_v5, %v41_v3  ;;  %vm101_vm6 = vcmp.lt.s32.totalorder %v64_v15, 32  ;;  %vm110_vm7 = vcmp.lt.s32.totalorder %v64_v15, 80  ;;  %s138_s24 = sshll.u32 %s254_s23, 4  ;;  %s139_s24 = int_to_ptr.vmem [resolvable:$true] %s138_s24 }
  0x12   :  { %vm51_vm0 = vcmp.ge.f32.partialorder %v49_v6, 1.0  ;;  %vm52_vm1 = vcmp.ge.f32.partialorder %v50_v7, 1.0 }
  0x13   :  { %v151_v9 = vsel %vm51_vm0, 1.0, %v247_v8  ;;  %v152_v11 = vsel %vm52_vm1, 1.0, %v247_v8 }
  0x14   :  { %v57_v10 = vsub.f32 1.0, %v151_v9  ;;  %v58_v12 = vsub.f32 1.0, %v152_v11 }
  0x16   :  { %59 = vrot.lane.b32.xlu0 %v57_v10, %s248_s0 }
  0x1e   :  { %61 = vrot.lane.b32.xlu0 %v58_v12, %s248_s0 }
  0x88   :  { %v60_v14 = vpop.permute.xlu0 %59 }
  0x90   :  { %v62_v16 = vpop.permute.xlu0 %61 }
  0x91   :  { %v67_v17 = vsel %vm65_vm2, %v62_v16, %v60_v14  ;;  %v66_v19 = vsel %vm65_vm2, %v60_v14, %v62_v16 }
  0x92   :  { %v68_v18 = vadd.f32 %v67_v17, %v57_v10  ;;  %v69_v20 = vadd.f32 %v66_v19, %v58_v12 }
  0x94   :  { %70 = vrot.lane.b32.xlu1 %v68_v18, %s249_s1 }
  0x9c   :  { %72 = vrot.lane.b32.xlu1 %v69_v20, %s249_s1 }
 0x106   :  { %v71_v21 = vpop.permute.xlu1 %70 }
 0x10e   :  { %v73_v22 = vpop.permute.xlu1 %72 }
 0x10f   :  { %v76_v23 = vsel %vm74_vm3, %v73_v22, %v71_v21  ;;  %v75_v25 = vsel %vm74_vm3, %v71_v21, %v73_v22 }
 0x110   :  { %v77_v24 = vadd.f32 %v76_v23, %v68_v18  ;;  %v78_v26 = vadd.f32 %v75_v25, %v69_v20 }
 0x112   :  { %79 = vrot.lane.b32.xlu2 %v77_v24, %s250_s19 }
 0x11a   :  { %81 = vrot.lane.b32.xlu2 %v78_v26, %s250_s19 }
 0x16c   :  { %v80_v27 = vpop.permute.xlu2 %79 }
 0x174   :  { %v82_v28 = vpop.permute.xlu2 %81 }
 0x175   :  { %v84_v29 = vsel %vm83_vm4, %v80_v27, %v82_v28  ;;  %v85_v30 = vsel %vm83_vm4, %v82_v28, %v80_v27 }
 0x176   :  { %v86_v31 = vadd.f32 %v84_v29, %v77_v24  ;;  %v87_v32 = vadd.f32 %v85_v30, %v78_v26 }
 0x178   :  { %90 = vrot.lane.b32.xlu1 %v87_v32, %s251_s20  ;;  %88 = vrot.lane.b32.xlu0 %v86_v31, %s251_s20 }
 0x1ea   :  { %v91_v33 = vpop.permute.xlu1 %90  ;;  %v89_v34 = vpop.permute.xlu0 %88 }
 0x1eb   :  { %v93_v35 = vsel %vm92_vm5, %v89_v34, %v91_v33  ;;  %v94_v36 = vsel %vm92_vm5, %v91_v33, %v89_v34 }
 0x1ec   :  { %v95_v37 = vadd.f32 %v94_v36, %v86_v31  ;;  %v96_v38 = vadd.f32 %v93_v35, %v87_v32 }
 0x1ee   :  { %97 = vrot.lane.b32.xlu2 %v95_v37, %s252_s21  ;;  %99 = vrot.lane.b32.xlu0 %v96_v38, %s252_s21 }
 0x248   :  { %v98_v39 = vpop.permute.xlu2 %97 }
 0x260   :  { %v100_v40 = vpop.permute.xlu0 %99 }
 0x261   :  { %v102_v41 = vsel %vm101_vm6, %v98_v39, %v100_v40  ;;  %v103_v42 = vsel %vm101_vm6, %v100_v40, %v98_v39 }
 0x262   :  { %v104_v43 = vadd.f32 %v103_v42, %v95_v37  ;;  %v105_v44 = vadd.f32 %v102_v41, %v96_v38 }
 0x264   :  { %106 = vrot.lane.b32.xlu1 %v104_v43, %s253_s22  ;;  %108 = vrot.lane.b32.xlu2 %v105_v44, %s253_s22 }
 0x2be   :  { %v109_v45 = vpop.permute.xlu2 %108 }
 0x2d6   :  { %v107_v46 = vpop.permute.xlu1 %106 }
 0x2d7   :  { %v111_v47 = vsel %vm110_vm7, %v107_v46, %v109_v45  ;;  %v112_v48 = vsel %vm110_vm7, %v109_v45, %v107_v46 }
 0x2d8   :  { %v113_v49 = vadd.f32 %v111_v47, %v104_v43  ;;  %v114_v50 = vadd.f32 %v112_v48, %v105_v44 }
 0x2da   :  { %vm115_vm8 = vcmp.lt.f32.partialorder %v113_v49, 0.5  ;;  %vm116_vm9 = vcmp.lt.f32.partialorder %v114_v50, 0.5 }
 0x2db   :  { %v153_v51 = vsel %vm115_vm8, 1.0, %v247_v8  ;;  %v154_v52 = vsel %vm116_vm9, 1.0, %v247_v8 }
 0x2dc   :  { %v121_v53 = vadd.f32 %v154_v52, %v153_v51 }
 0x2de   :  { %122 = vadd.xlane.f32.xlu0 %v121_v53 }
 0x351   :  { %v123_v54 = vpop.xlane.xlu0 %122 }
 0x352   :  { %v124_v55 = vrot.slane %v123_v54, 4 }
 0x354   :  { %v125_v56 = vadd.f32 %v124_v55, %v123_v54 }
 0x356   :  { %v126_v57 = vrot.slane %v125_v56, 2 }
 0x358   :  { %v127_v58 = vadd.f32 %v126_v57, %v125_v56 }
 0x35a   :  { %v128_v59 = vrot.slane %v127_v58, 1 }
 0x35c   :  { %v129_v60 = vadd.f32 %v128_v59, %v127_v58 }
 0x35e   :  { %155 = vpush %v129_v60 }
 0x38f   :  { %s156_s28 = spop %155 }
 0x390   :  { %v131_v61 = vstv %s156_s28 }
 0x391   :  { %132 = vst [vmem:[#allocation7] sm:$0x1] %v131_v61 }
 0x392   :  { %143 = dma.vmem_to_hbm [thread:$0]  %s139_s24, 16, %s141_s27, [#allocation4]  }
 0x393   :  { %243 = dma.done.wait [#allocation4], 16  }
 0x394   :  { %244 = vsyncadd [#allocation4], 4294967280 }
 0x395   :  { %148 = vsyncpa [#allocation3], 1 }
 0x396   :  { %149 = vsyncpa [#allocation6], 1 }
 0x397   :  { %150 = vsyncpa [#allocation4], 1 }

</bundles_post_ra>
